<compile_context>
chip_gen: v7x
topology: tpu7x:2x2x1
jax: 0.10.0
libtpu: 0.0.40
codegen_flags: <defaults>
</compile_context>

<pallas_src>
import jax
import jax.numpy as jnp
from jax.experimental import pallas as pl
from jax.experimental.pallas import tpu as pltpu

LANES = 128


def _make_kernel(B, HW, Cout):
    def kernel(p_ref, w_ref, b_ref, wf_ref, bf_ref, out_ref):
        # p_ref : (B*HW, 9*Cin) bf16  im2col patches
        # w_ref : (9*Cin, Cout) bf16  conv weight with BatchNorm folded in
        # b_ref : (1, Cout)     f32   conv+BN bias
        # wf_ref: (Cout, 128)   bf16  FC weight, zero-padded to 128 lanes
        # bf_ref: (1, 128)      f32   FC bias, zero-padded
        # out_ref: (B, 128)     f32   padded logits (lane-dense single store)
        y = jnp.dot(p_ref[...], w_ref[...],
                    preferred_element_type=jnp.float32)          # conv as one matmul
        y = y + b_ref[...]                                       # conv+BN bias
        y = jnp.maximum(y, 0.0)                                  # ReLU
        pooled = jnp.mean(y.reshape(B, HW, Cout), axis=1)        # global avg pool -> (B, Cout)
        logits = jnp.dot(pooled.astype(jnp.bfloat16), wf_ref[...],
                         preferred_element_type=jnp.float32) + bf_ref[...]
        out_ref[...] = logits
    return kernel


def classifier_forward(x_nchw, wc, bc, gamma, beta, mean, var, wf, bf, eps=1e-5):
    """x_nchw: (B, Cin, H, W) f32.  wc: (3,3,Cin,Cout).  wf: (Cout, n_classes)."""
    B, Cin, H, W = x_nchw.shape
    Cout = wc.shape[-1]
    n_classes = wf.shape[-1]
    HW = H * W
    K9 = 9 * Cin

    # ---- parameter prep (tiny, one-time; fused by XLA) --------------------
    # Fold BatchNorm (eval) into the conv weight and bias.
    scale = gamma * jax.lax.rsqrt(var + eps)                                 # (Cout,)
    w_fused = (wc * scale[None, None, None, :]).reshape(K9, Cout).astype(jnp.bfloat16)
    b_fused = ((bc - mean) * scale + beta).reshape(1, Cout).astype(jnp.float32)

    # Pad FC output dim up to 128 lanes -> unmasked lane-dense output store.
    nc_pad = LANES
    wf_pad = jnp.zeros((Cout, nc_pad), jnp.bfloat16).at[:, :n_classes].set(
        wf.astype(jnp.bfloat16))
    bf_pad = jnp.zeros((1, nc_pad), jnp.float32).at[:, :n_classes].set(bf)

    # im2col in the wrapper: (B*H*W, 9*Cin) with column order (kh, kw, cin)
    # matching the (3,3,Cin,Cout) weight reshape.  The spatial padding is part
    # of this single fusion — no standalone padded input copy is read by the
    # kernel, and the patch matrix is bf16 (halved HBM read).
    x_nhwc = jnp.transpose(x_nchw, (0, 2, 3, 1))
    xp = jnp.pad(x_nhwc, ((0, 0), (1, 1), (1, 1), (0, 0)))
    taps = [xp[:, kh:kh + H, kw:kw + W, :] for kh in range(3) for kw in range(3)]
    patches = jnp.concatenate(taps, axis=-1).reshape(B * HW, K9).astype(jnp.bfloat16)

    kern = _make_kernel(B, HW, Cout)
    out = pl.pallas_call(
        kern,
        out_shape=jax.ShapeDtypeStruct((B, nc_pad), jnp.float32),
        grid=(1,),                                     # whole batch in one program
        in_specs=[
            pl.BlockSpec((B * HW, K9), lambda i: (0, 0)),   # im2col patches
            pl.BlockSpec((K9, Cout), lambda i: (0, 0)),     # fused conv weight
            pl.BlockSpec((1, Cout), lambda i: (0, 0)),      # fused conv bias
            pl.BlockSpec((Cout, nc_pad), lambda i: (0, 0)), # padded FC weight
            pl.BlockSpec((1, nc_pad), lambda i: (0, 0)),    # padded FC bias
        ],
        out_specs=pl.BlockSpec((B, nc_pad), lambda i: (0, 0)),
        compiler_params=pltpu.CompilerParams(dimension_semantics=("arbitrary",)),
    )(patches, w_fused, b_fused, wf_pad, bf_pad)
    return out[:, :n_classes]


def reference(x, wc_oihw, bc, gamma, beta, mean, var, wf, bf, eps=1e-5):
    """Pure-JAX f32 reference mirroring the PyTorch forward (NCHW)."""
    y = jax.lax.conv_general_dilated(
        x, wc_oihw, window_strides=(1, 1), padding=((1, 1), (1, 1)),
        dimension_numbers=("NCHW", "OIHW", "NCHW"))
    y = y + bc[None, :, None, None]
    y = (y - mean[None, :, None, None]) * jax.lax.rsqrt(var + eps)[None, :, None, None]
    y = y * gamma[None, :, None, None] + beta[None, :, None, None]
    y = jnp.maximum(y, 0.0)
    p = y.mean(axis=(2, 3))                 # AdaptiveAvgPool2d((1,1)) + flatten
    return p @ wf + bf                      # nn.Linear


if __name__ == "__main__":
    B, Cin, H, W, n_classes = 2, 4, 16, 16, 10
    Cout = 4 * Cin

    key = jax.random.PRNGKey(0)
    kx, kw1, kb1, kwf, kbf = jax.random.split(key, 5)

    # Deterministic synthetic parameters (shapes follow the PyTorch module).
    x = jax.random.normal(kx, (B, Cin, H, W), jnp.float32)
    wc_oihw = jax.random.normal(kw1, (Cout, Cin, 3, 3), jnp.float32) * 0.1  # PyTorch layout
    wc = jnp.transpose(wc_oihw, (2, 3, 1, 0))                               # -> (kh,kw,Cin,Cout)
    bc = jax.random.normal(kb1, (Cout,), jnp.float32) * 0.1
    gamma = jnp.ones((Cout,), jnp.float32)          # BatchNorm default init
    beta = jnp.zeros((Cout,), jnp.float32)
    mean = jnp.zeros((Cout,), jnp.float32)          # running stats (eval mode)
    var = jnp.ones((Cout,), jnp.float32)
    wf_torch = jax.random.normal(kwf, (n_classes, Cout), jnp.float32) * 0.1  # PyTorch (out,in)
    wf = wf_torch.T                                                          # -> (Cout, n_classes)
    bf = jax.random.normal(kbf, (n_classes,), jnp.float32) * 0.1

    out = classifier_forward(x, wc, bc, gamma, beta, mean, var, wf, bf)
    out = jax.block_until_ready(out)

    ref = reference(x, wc_oihw, bc, gamma, beta, mean, var, wf, bf)
    assert out.shape == (B, n_classes)
    # Tolerance widened vs the f32 version: matmul operands are bf16 on the
    # MXU (f32 accumulation), per the performance review.
    assert jnp.allclose(out, ref, atol=1e-2, rtol=1e-2), (out, ref)
    print("KERNEL_OK")
</pallas_src>

<mosaic_0001>
module attributes {stable_mosaic.version = 11 : i64} {
  func.func @kernel(%arg0: i32, %arg1: memref<512x36xbf16, #tpu.memory_space<vmem>>, %arg2: memref<36x16xbf16, #tpu.memory_space<vmem>>, %arg3: memref<1x16xf32, #tpu.memory_space<vmem>>, %arg4: memref<16x128xbf16, #tpu.memory_space<vmem>>, %arg5: memref<1x128xf32, #tpu.memory_space<vmem>>, %arg6: memref<2x128xf32, #tpu.memory_space<vmem>>) attributes {dimension_semantics = [#tpu.dimension_semantics<arbitrary>], iteration_bounds = array<i64: 1>, scalar_prefetch = 0 : i64, scratch_operands = 0 : i64, tpu.core_type = #tpu.core_type<tc>, window_params = [{pipeline_mode = #tpu.pipeline_mode<synchronous>, transform_indices = @transform_0, window_bounds = array<i64: 512, 36>}, {pipeline_mode = #tpu.pipeline_mode<synchronous>, transform_indices = @transform_1, window_bounds = array<i64: 36, 16>}, {pipeline_mode = #tpu.pipeline_mode<synchronous>, transform_indices = @transform_2, window_bounds = array<i64: 1, 16>}, {pipeline_mode = #tpu.pipeline_mode<synchronous>, transform_indices = @transform_3, window_bounds = array<i64: 16, 128>}, {pipeline_mode = #tpu.pipeline_mode<synchronous>, transform_indices = @transform_4, window_bounds = array<i64: 1, 128>}, {pipeline_mode = #tpu.pipeline_mode<synchronous>, transform_indices = @transform_5, window_bounds = array<i64: 2, 128>}]} {
    %c0 = arith.constant 0 : index
    %c0_0 = arith.constant 0 : index
    %0 = vector.load %arg1[%c0, %c0_0] : memref<512x36xbf16, #tpu.memory_space<vmem>>, vector<512x36xbf16>
    %c0_1 = arith.constant 0 : index
    %c0_2 = arith.constant 0 : index
    %1 = vector.load %arg2[%c0_1, %c0_2] : memref<36x16xbf16, #tpu.memory_space<vmem>>, vector<36x16xbf16>
    %cst = arith.constant dense<0.000000e+00> : vector<512x16xf32>
    %2 = tpu.matmul %0, %1, %cst {dimension_numbers = #tpu.dot_dimension_numbers<[1], [0], [0], [1], [0, 0, 1, 1], [], []>} : vector<512x36xbf16>, vector<36x16xbf16>, vector<512x16xf32> -> vector<512x16xf32>
    %c0_3 = arith.constant 0 : index
    %c0_4 = arith.constant 0 : index
    %3 = vector.load %arg3[%c0_3, %c0_4] : memref<1x16xf32, #tpu.memory_space<vmem>>, vector<1x16xf32>
    %4 = vector.broadcast %3 : vector<1x16xf32> to vector<512x16xf32>
    %5 = arith.addf %2, %4 : vector<512x16xf32>
    %cst_5 = arith.constant 0.000000e+00 : f32
    %6 = vector.broadcast %cst_5 : f32 to vector<512x16xf32>
    %7 = arith.maximumf %5, %6 : vector<512x16xf32>
    %8 = vector.shape_cast %7 : vector<512x16xf32> to vector<2x256x16xf32>
    %cst_6 = arith.constant dense<0.000000e+00> : vector<2x16xf32>
    %9 = vector.multi_reduction <add>, %8, %cst_6 [1] : vector<2x256x16xf32> to vector<2x16xf32>
    %cst_7 = arith.constant 2.560000e+02 : f32
    %10 = vector.broadcast %cst_7 : f32 to vector<2x16xf32>
    %11 = arith.divf %9, %10 : vector<2x16xf32>
    %12 = arith.truncf %11 : vector<2x16xf32> to vector<2x16xbf16>
    %c0_8 = arith.constant 0 : index
    %c0_9 = arith.constant 0 : index
    %13 = vector.load %arg4[%c0_8, %c0_9] : memref<16x128xbf16, #tpu.memory_space<vmem>>, vector<16x128xbf16>
    %cst_10 = arith.constant dense<0.000000e+00> : vector<2x128xf32>
    %14 = tpu.matmul %12, %13, %cst_10 {dimension_numbers = #tpu.dot_dimension_numbers<[1], [0], [0], [1], [0, 0, 1, 1], [], []>} : vector<2x16xbf16>, vector<16x128xbf16>, vector<2x128xf32> -> vector<2x128xf32>
    %c0_11 = arith.constant 0 : index
    %c0_12 = arith.constant 0 : index
    %15 = vector.load %arg5[%c0_11, %c0_12] : memref<1x128xf32, #tpu.memory_space<vmem>>, vector<1x128xf32>
    %16 = vector.broadcast %15 : vector<1x128xf32> to vector<2x128xf32>
    %17 = arith.addf %14, %16 : vector<2x128xf32>
    %c0_13 = arith.constant 0 : index
    %c0_14 = arith.constant 0 : index
    %18 = vector.load %arg6[%c0_13, %c0_14] : memref<2x128xf32, #tpu.memory_space<vmem>>, vector<2x128xf32>
    tpu.vector_store %arg6[%c0_13, %c0_14], %17 {strides = array<i32>} : memref<2x128xf32, #tpu.memory_space<vmem>>, vector<2x128xf32>,
    return
  }
  func.func @transform_0(%arg0: i32) -> (i32, i32) {
    %c0_i32 = arith.constant 0 : i32
    %c0_i32_0 = arith.constant 0 : i32
    %c0_i32_1 = arith.constant 0 : i32
    return %c0_i32, %c0_i32_0 : i32, i32
  }
  func.func @transform_1(%arg0: i32) -> (i32, i32) {
    %c0_i32 = arith.constant 0 : i32
    %c0_i32_0 = arith.constant 0 : i32
    %c0_i32_1 = arith.constant 0 : i32
    return %c0_i32, %c0_i32_0 : i32, i32
  }
  func.func @transform_2(%arg0: i32) -> (i32, i32) {
    %c0_i32 = arith.constant 0 : i32
    %c0_i32_0 = arith.constant 0 : i32
    %c0_i32_1 = arith.constant 0 : i32
    return %c0_i32, %c0_i32_0 : i32, i32
  }
  func.func @transform_3(%arg0: i32) -> (i32, i32) {
    %c0_i32 = arith.constant 0 : i32
    %c0_i32_0 = arith.constant 0 : i32
    %c0_i32_1 = arith.constant 0 : i32
    return %c0_i32, %c0_i32_0 : i32, i32
  }
  func.func @transform_4(%arg0: i32) -> (i32, i32) {
    %c0_i32 = arith.constant 0 : i32
    %c0_i32_0 = arith.constant 0 : i32
    %c0_i32_1 = arith.constant 0 : i32
    return %c0_i32, %c0_i32_0 : i32, i32
  }
  func.func @transform_5(%arg0: i32) -> (i32, i32) {
    %c0_i32 = arith.constant 0 : i32
    %c0_i32_0 = arith.constant 0 : i32
    %c0_i32_1 = arith.constant 0 : i32
    return %c0_i32, %c0_i32_0 : i32, i32
  }
}

</mosaic_0001>

<bundles_post_ra>
// kernel: tpu_custom_call.1
= control target key start
LH: loop header
LB: loop body
LE: loop exit
PB: predicated region body
PF: predicated region fallthrough
CT: control target
= control target key end

     0   :  { %vm273_vm0 = vcmask 293888   ;;  %vm370_vm1 = vcmask 1041408   ;;  %s1618_s0 = inlined_call_operand.vmem [shape: bf16[512,36], index: 0, kind: input, shape index: {}]   ;;  %s1619_s1 = inlined_call_operand.vmem [shape: bf16[36,16], index: 1, kind: input, shape index: {}]   ;;  %s1620_s2 = inlined_call_operand.vmem [shape: f32[1,16], index: 2, kind: input, shape index: {}]   ;;  %s1621_s3 = inlined_call_operand.vmem [shape: bf16[16,128], index: 3, kind: input, shape index: {}]   ;;  %s1622_s4 = inlined_call_operand.vmem [shape: f32[1,128], index: 4, kind: input, shape index: {}]   ;;  %s1623_s5 = inlined_call_operand.hbm [shape: f32[2,128], index: 5, kind: output, shape index: {}]  }
   0x1   :  { %v1146_v0 = vld [vmem:[%s1619_s1] sm:$0xff]   ;;  %v1147_v1 = vld [vmem:[%s1619_s1 + $0x8] sm:$0xff]   ;;  %v1148_v2 = vld [vmem:[%s1619_s1 + $0x10] ss:$0 sps:$4 sm:$0x33]  }
   0x2   :  { %1059 = vmatprep.subr.bf16.mxu0 %v1146_v0  ;;  %v1149_v3 = vld [vmem:[%s1618_s0] sm:$0xff]   ;;  %1135 = vmatprep.subr.bf16.mxu1 %v1146_v0  ;;  %v372_v4 = vsel %vm370_vm1, %v1148_v2, 0  ;;  %v1150_v5 = vld [vmem:[%s1618_s0 + $0x8] sm:$0xff]   ;;  %v1151_v6 = vld [vmem:[%s1618_s0 + $0x10] sm:$0xff]  }
   0x3   :  { %1060 = vmatpush3.bf16.msra.mxu0 %v1146_v0  ;;  %1138 = vmatpush3.bf16.msra.mxu1 %v1146_v0  ;;  %v1152_v7 = vld [vmem:[%s1618_s0 + $0x18] sm:$0xff]   ;;  %v1153_v8 = vld [vmem:[%s1618_s0 + $0x20] sm:$0xff]   ;;  %v1167_v9 = vld [vmem:[%s1618_s0 + $0x90] sm:$0xff]  }
   0x4   :  { %1061 = vmatprep.subr.bf16.mxu0 %v1147_v1  ;;  %1065 = vmatprep.mubr.msk.bf16.mxu0 %vm273_vm0, %v1149_v3  ;;  %v1168_v10 = vld [vmem:[%s1618_s0 + $0x98] sm:$0xff]   ;;  %v1169_v11 = vld [vmem:[%s1618_s0 + $0xa0] sm:$0xff]   ;;  %v1154_v12 = vld [vmem:[%s1618_s0 + $0x28] sm:$0xff]  }
   0x5   :  { %1136 = vmatprep.subr.bf16.mxu1 %v1147_v1  ;;  %1101 = vmatprep.mubr.msk.bf16.mxu1 %vm273_vm0, %v1167_v9  ;;  %v1155_v13 = vld [vmem:[%s1618_s0 + $0x30] sm:$0xff]   ;;  %v1170_v14 = vld [vmem:[%s1618_s0 + $0xa8] sm:$0xff]   ;;  %v1156_v16 = vld [vmem:[%s1618_s0 + $0x38] sm:$0xff]  }
   0x6   :  { %v1171_v15 = vld [vmem:[%s1618_s0 + $0xb0] sm:$0xff]   ;;  %v1157_v17 = vld [vmem:[%s1618_s0 + $0x40] sm:$0xff]  }
   0x7   :  { %1062 = vmatpush3.bf16.msra.mxu0 %v1147_v1  ;;  %1139 = vmatpush3.bf16.msra.mxu1 %v1147_v1 }
   0x8   :  { %1141 = vmatprep.subr.msk.bf16.mxu0 %vm370_vm1, %v1148_v2  ;;  %1142 = vmatprep.subr.msk.bf16.mxu1 %vm370_vm1, %v1148_v2 }
   0xb   :  { %1064 = vmatpush3.bf16.msra.mxu0 %v372_v4  ;;  %1140 = vmatpush3.bf16.msra.mxu1 %v372_v4 }
   0xe   :  { %1066 = vmatmul.mubr.msk.bf16.vlgmr.msra.gmra.mrb[0].mxu0 %vm273_vm0, %v1150_v5  ;;  %1102 = vmatmul.mubr.msk.bf16.vlgmr.msra.gmra.mrb[0].mxu1 %vm273_vm0, %v1168_v10 }
   0xf   :  { %1069 = vmatprep.mubr.msk.bf16.mxu0 %vm273_vm0, %v1151_v6  ;;  %1105 = vmatprep.mubr.msk.bf16.mxu1 %vm273_vm0, %v1169_v11 }
  0x16   :  { %1070 = vmatmul.mubr.msk.bf16.gmra.mrb[4].mxu0 %vm273_vm0, %v1152_v7  ;;  %1106 = vmatmul.mubr.msk.bf16.gmra.mrb[4].mxu1 %vm273_vm0, %v1170_v14 }
  0x17   :  { %1073 = vmatprep.mubr.msk.bf16.mxu0 %vm273_vm0, %v1153_v8  ;;  %1109 = vmatprep.mubr.msk.bf16.mxu1 %vm273_vm0, %v1171_v15 }
  0x1e   :  { %1074 = vmatmul.mubr.msk.bf16.gmra.mrb[8].mxu0 %vm273_vm0, %v1154_v12 }
  0x1f   :  { %1077 = vmatprep.mubr.msk.bf16.mxu0 %vm273_vm0, %v1155_v13 }
  0x20   :  { %10 = vsyncpa [#allocation3], 0  ;;  %v1172_v18 = vld [vmem:[%s1618_s0 + $0xb8] sm:$0xff]   ;;  %v1173_v19 = vld [vmem:[%s1618_s0 + $0xc0] sm:$0xff]   ;;  %v1206_v37 = vmov 0.0   ;;  %vm727_vm2 = vcmask 130048  }
  0x21   :  { %1110 = vmatmul.mubr.msk.bf16.gmra.mrb[8].mxu1 %vm273_vm0, %v1172_v18  ;;  %v1158_v20 = vld [vmem:[%s1618_s0 + $0x48] sm:$0xff]   ;;  %v1159_v21 = vld [vmem:[%s1618_s0 + $0x50] sm:$0xff]   ;;  %v1160_v24 = vld [vmem:[%s1618_s0 + $0x58] sm:$0xff]   ;;  %1129 = vmatprep.subr.bf16.mxu1 %v1206_v37  ;;  %vm1207_vm3 = vmmov 0   ;;  %vm884_vm4 = vcmask 1041409  }
  0x22   :  { %1113 = vmatprep.mubr.msk.bf16.mxu1 %vm273_vm0, %v1173_v19  ;;  %v1174_v22 = vld [vmem:[%s1618_s0 + $0xc8] sm:$0xff]   ;;  %v1175_v23 = vld [vmem:[%s1618_s0 + $0xd0] sm:$0xff]   ;;  %v1161_v25 = vld [vmem:[%s1618_s0 + $0x60] sm:$0xff]  }
  0x23   :  { %v1176_v26 = vld [vmem:[%s1618_s0 + $0xd8] sm:$0xff]   ;;  %v1177_v27 = vld [vmem:[%s1618_s0 + $0xe0] sm:$0xff]   ;;  %v1162_v28 = vld [vmem:[%s1618_s0 + $0x68] sm:$0xff]  }
  0x24   :  { %v1163_v29 = vld [vmem:[%s1618_s0 + $0x70] sm:$0xff]   ;;  %v1178_v30 = vld [vmem:[%s1618_s0 + $0xe8] sm:$0xff]   ;;  %v1164_v32 = vld [vmem:[%s1618_s0 + $0x78] sm:$0xff]  }
  0x25   :  { %v1179_v31 = vld [vmem:[%s1618_s0 + $0xf0] sm:$0xff]   ;;  %v1165_v33 = vld [vmem:[%s1618_s0 + $0x80] sm:$0xff]   ;;  %v1180_v34 = vld [vmem:[%s1618_s0 + $0xf8] sm:$0xff]  }
  0x26   :  { %1078 = vmatmul.mubr.msk.bf16.gmra.mrb[12].mxu0 %vm273_vm0, %v1156_v16  ;;  %v1166_v35 = vld [vmem:[%s1618_s0 + $0x88] sm:$0xff]   ;;  %v1181_v36 = vld [vmem:[%s1621_s3] sm:$0xff]   ;;  %s1208_s3 = smov [#allocation2]  }
  0x27   :  { %1081 = vmatprep.mubr.msk.bf16.mxu0 %vm273_vm0, %v1157_v17  ;;  %1130 = vmatpush3.bf16.msra.mxu1 %v1181_v36  ;;  %v1383_v38 = vld [vmem:[%s1620_s2] ss:$0 sm:$0xff]  ;;  %s943_s14 = sshll.u32 %s1208_s3, 4  ;;  %s944_s14 = int_to_ptr.vmem [resolvable:$true] %s943_s14 }
  0x28   :  { %s1182_s15 = scalar_lea.vmem %s944_s14, 32  ;;  %p1187_p1 = scmp.lt.s32.totalorder %s944_s14, %s944_s14 }
  0x29   :  { %1114 = vmatmul.mubr.msk.bf16.gmra.mrb[12].mxu1 %vm273_vm0, %v1174_v22  ;;  %p1183_p0 = scmp.ne.s32.totalorder %s944_s14, %s1182_s15  ;;  %p1188_p2 = scmp.lt.s32.totalorder %s1182_s15, %s1182_s15 }
  0x2a   :  { %1117 = vmatprep.mubr.msk.bf16.mxu1 %vm273_vm0, %v1175_v23 }
  0x2b   :  { %p1189_p3 = por %p1188_p2, %p1187_p1 }
  0x2d   :  { %p1190_p4 = pnand %p1189_p3, %p1183_p0 }
  0x2e   :  { %1082 = vmatmul.mubr.msk.bf16.gmra.mrb[16].mxu0 %vm273_vm0, %v1158_v20 }
  0x2f   :  { %1085 = vmatprep.mubr.msk.bf16.mxu0 %vm273_vm0, %v1159_v21 }
  0x31   :  { %1118 = vmatmul.mubr.msk.bf16.gmra.mrb[16].mxu1 %vm273_vm0, %v1176_v26 }
  0x32   :  { %1121 = vmatprep.mubr.msk.bf16.mxu1 %vm273_vm0, %v1177_v27 }
  0x36   :  { %1086 = vmatmul.mubr.msk.bf16.gmra.mrb[20].mxu0 %vm273_vm0, %v1160_v24 }
  0x37   :  { %1089 = vmatprep.mubr.msk.bf16.mxu0 %vm273_vm0, %v1161_v25 }
  0x39   :  { %1122 = vmatmul.mubr.msk.bf16.gmra.mrb[20].mxu1 %vm273_vm0, %v1178_v30 }
  0x3a   :  { %1125 = vmatprep.mubr.msk.bf16.mxu1 %vm273_vm0, %v1179_v31 }
  0x3e   :  { %1090 = vmatmul.mubr.msk.bf16.gmra.mrb[24].mxu0 %vm273_vm0, %v1162_v28 }
  0x3f   :  { %1093 = vmatprep.mubr.msk.bf16.mxu0 %vm273_vm0, %v1163_v29 }
  0x41   :  { %1126 = vmatmul.mubr.msk.bf16.gmra.mrb[24].mxu1 %vm273_vm0, %v1180_v34 }
  0x42   :  { %1131 = vmatprep.mubr.msk.bf16.mxu1 %vm1207_vm3, %v1206_v37 }
  0x46   :  { %1094 = vmatmul.mubr.msk.bf16.gmra.mrb[28].mxu0 %vm273_vm0, %v1164_v32 }
  0x47   :  { %1097 = vmatprep.mubr.msk.bf16.mxu0 %vm273_vm0, %v1165_v33 }
  0x4e   :  { %1098 = vmatmul.mubr.msk.bf16.gmra.mrb[32].mxu0 %vm273_vm0, %v1166_v35 }
  0xe1   :  { %v1067_v39 = vpop.f32.mrb[0].mxu0  ;;  %v1394_v60 = vpop.f32.mrb[0].mxu1 }
  0xe2   :  { %v408_v40 = vpop.f32.mrb[1].mxu0  ;;  %v417_v41 = vadd.f32 %v1067_v39, %v1383_v38  ;;  %v1396_v63 = vpop.f32.mrb[1].mxu1 }
  0xe3   :  { %v409_v42 = vadd.f32 %v1383_v38, %v408_v40  ;;  %v1068_v43 = vpop.f32.mrb[2].mxu0  ;;  %v1401_v4 = vpop.f32.mrb[2].mxu1 }
  0xe4   :  { %v411_v44 = vpop.f32.mrb[3].mxu0  ;;  %v420_v46 = vadd.f32 %v1068_v43, %v1383_v38  ;;  %v665_v48 = vmax.f32 %v417_v41, 0.0  ;;  %v1403_v6 = vpop.f32.mrb[3].mxu1 }
  0xe5   :  { %v663_v45 = vmax.f32 %v409_v42, 0.0  ;;  %v412_v47 = vadd.f32 %v1383_v38, %v411_v44 }
  0xe6   :  { %v666_v51 = vmax.f32 %v420_v46, 0.0  ;;  %v731_v56 = vsel %vm727_vm2, %v665_v48, 0.0 }
  0xe7   :  { %v664_v49 = vmax.f32 %v412_v47, 0.0  ;;  %v728_v50 = vsel %vm727_vm2, %v663_v45, 0.0 }
  0xe8   :  { %v733_v0 = vsel %vm727_vm2, %v666_v51, 0.0 }
  0xe9   :  { %v729_v52 = vsel %vm727_vm2, %v664_v49, 0.0  ;;  %v1071_v53 = vpop.f32.mrb[4].mxu0  ;;  %v1410_v20 = vpop.f32.mrb[4].mxu1 }
  0xea   :  { %v730_v54 = vadd.f32 %v729_v52, %v728_v50  ;;  %v424_v55 = vpop.f32.mrb[5].mxu0  ;;  %v433_v57 = vadd.f32 %v1071_v53, %v1383_v38  ;;  %v1412_v23 = vpop.f32.mrb[5].mxu1 }
  0xeb   :  { %v425_v58 = vadd.f32 %v1383_v38, %v424_v55  ;;  %v1072_v59 = vpop.f32.mrb[6].mxu0  ;;  %v1417_v28 = vpop.f32.mrb[6].mxu1 }
  0xec   :  { %v732_v61 = vadd.f32 %v731_v56, %v730_v54  ;;  %v427_v62 = vpop.f32.mrb[7].mxu0  ;;  %v436_v2 = vadd.f32 %v1072_v59, %v1383_v38  ;;  %v669_v7 = vmax.f32 %v433_v57, 0.0  ;;  %v1419_v30 = vpop.f32.mrb[7].mxu1 }
  0xed   :  { %v667_v1 = vmax.f32 %v425_v58, 0.0  ;;  %v428_v3 = vadd.f32 %v1383_v38, %v427_v62 }
  0xee   :  { %v734_v5 = vadd.f32 %v733_v0, %v732_v61  ;;  %v670_v11 = vmax.f32 %v436_v2, 0.0  ;;  %v739_v16 = vsel %vm727_vm2, %v669_v7, 0.0 }
  0xef   :  { %v735_v8 = vsel %vm727_vm2, %v667_v1, 0.0  ;;  %v668_v9 = vmax.f32 %v428_v3, 0.0 }
  0xf0   :  { %v736_v10 = vadd.f32 %v735_v8, %v734_v5  ;;  %v741_v24 = vsel %vm727_vm2, %v670_v11, 0.0 }
  0xf1   :  { %v737_v12 = vsel %vm727_vm2, %v668_v9, 0.0  ;;  %v1075_v13 = vpop.f32.mrb[8].mxu0 }
  0xf2   :  { %v738_v14 = vadd.f32 %v737_v12, %v736_v10  ;;  %v440_v15 = vpop.f32.mrb[9].mxu0  ;;  %v449_v17 = vadd.f32 %v1075_v13, %v1383_v38 }
  0xf3   :  { %v441_v18 = vadd.f32 %v1383_v38, %v440_v15  ;;  %v1076_v19 = vpop.f32.mrb[10].mxu0 }
  0xf4   :  { %v740_v21 = vadd.f32 %v739_v16, %v738_v14  ;;  %v443_v22 = vpop.f32.mrb[11].mxu0  ;;  %v452_v26 = vadd.f32 %v1076_v19, %v1383_v38  ;;  %v673_v31 = vmax.f32 %v449_v17, 0.0  ;;  %v1427_v46 = vpop.f32.mrb[8].mxu1 }
  0xf5   :  { %v671_v25 = vmax.f32 %v441_v18, 0.0  ;;  %v444_v27 = vadd.f32 %v1383_v38, %v443_v22  ;;  %v1429_v49 = vpop.f32.mrb[9].mxu1 }
  0xf6   :  { %v742_v29 = vadd.f32 %v741_v24, %v740_v21  ;;  %v674_v35 = vmax.f32 %v452_v26, 0.0  ;;  %v747_v42 = vsel %vm727_vm2, %v673_v31, 0.0  ;;  %v1434_v53 = vpop.f32.mrb[10].mxu1 }
  0xf7   :  { %v743_v32 = vsel %vm727_vm2, %v671_v25, 0.0  ;;  %v672_v33 = vmax.f32 %v444_v27, 0.0  ;;  %v1436_v55 = vpop.f32.mrb[11].mxu1 }
  0xf8   :  { %v744_v34 = vadd.f32 %v743_v32, %v742_v29  ;;  %v749_v50 = vsel %vm727_vm2, %v674_v35, 0.0 }
  0xf9   :  { %v745_v36 = vsel %vm727_vm2, %v672_v33, 0.0  ;;  %v1079_v39 = vpop.f32.mrb[12].mxu0 }
  0xfa   :  { %v746_v40 = vadd.f32 %v745_v36, %v744_v34  ;;  %v456_v41 = vpop.f32.mrb[13].mxu0  ;;  %v465_v43 = vadd.f32 %v1079_v39, %v1383_v38 }
  0xfb   :  { %v457_v44 = vadd.f32 %v1383_v38, %v456_v41  ;;  %v1080_v45 = vpop.f32.mrb[14].mxu0 }
  0xfc   :  { %v748_v47 = vadd.f32 %v747_v42, %v746_v40  ;;  %v459_v48 = vpop.f32.mrb[15].mxu0  ;;  %v468_v52 = vadd.f32 %v1080_v45, %v1383_v38  ;;  %v677_v56 = vmax.f32 %v465_v43, 0.0  ;;  %v1443_v9 = vpop.f32.mrb[12].mxu1 }
  0xfd   :  { %v675_v51 = vmax.f32 %v457_v44, 0.0  ;;  %v460_v37 = vadd.f32 %v1383_v38, %v459_v48  ;;  %v1445_v12 = vpop.f32.mrb[13].mxu1 }
  0xfe   :  { %v750_v54 = vadd.f32 %v749_v50, %v748_v47  ;;  %v678_v61 = vmax.f32 %v468_v52, 0.0  ;;  %v755_v3 = vsel %vm727_vm2, %v677_v56, 0.0  ;;  %v1450_v17 = vpop.f32.mrb[14].mxu1 }
  0xff   :  { %v751_v57 = vsel %vm727_vm2, %v675_v51, 0.0  ;;  %v676_v58 = vmax.f32 %v460_v37, 0.0  ;;  %v1452_v19 = vpop.f32.mrb[15].mxu1 }
 0x100   :  { %v752_v59 = vadd.f32 %v751_v57, %v750_v54  ;;  %v757_v13 = vsel %vm727_vm2, %v678_v61, 0.0 }
 0x101   :  { %v753_v62 = vsel %vm727_vm2, %v676_v58, 0.0  ;;  %v1083_v0 = vpop.f32.mrb[16].mxu0 }
 0x102   :  { %v754_v1 = vadd.f32 %v753_v62, %v752_v59  ;;  %v472_v2 = vpop.f32.mrb[17].mxu0  ;;  %v481_v5 = vadd.f32 %v1083_v0, %v1383_v38 }
 0x103   :  { %v473_v7 = vadd.f32 %v1383_v38, %v472_v2  ;;  %v1084_v8 = vpop.f32.mrb[18].mxu0 }
 0x104   :  { %v756_v10 = vadd.f32 %v755_v3, %v754_v1  ;;  %v475_v11 = vpop.f32.mrb[19].mxu0  ;;  %v484_v15 = vadd.f32 %v1084_v8, %v1383_v38  ;;  %v681_v21 = vmax.f32 %v481_v5, 0.0  ;;  %v1459_v39 = vpop.f32.mrb[16].mxu1 }
 0x105   :  { %v679_v14 = vmax.f32 %v473_v7, 0.0  ;;  %v476_v16 = vadd.f32 %v1383_v38, %v475_v11  ;;  %v1461_v42 = vpop.f32.mrb[17].mxu1 }
 0x106   :  { %v758_v18 = vadd.f32 %v757_v13, %v756_v10  ;;  %v682_v26 = vmax.f32 %v484_v15, 0.0  ;;  %v763_v33 = vsel %vm727_vm2, %v681_v21, 0.0  ;;  %v1466_v48 = vpop.f32.mrb[18].mxu1 }
 0x107   :  { %v759_v22 = vsel %vm727_vm2, %v679_v14, 0.0  ;;  %v680_v24 = vmax.f32 %v476_v16, 0.0  ;;  %v1468_v51 = vpop.f32.mrb[19].mxu1 }
 0x108   :  { %v760_v25 = vadd.f32 %v759_v22, %v758_v18  ;;  %v765_v43 = vsel %vm727_vm2, %v682_v26, 0.0 }
 0x109   :  { %v761_v27 = vsel %vm727_vm2, %v680_v24, 0.0  ;;  %v1087_v29 = vpop.f32.mrb[20].mxu0 }
 0x10a   :  { %v762_v31 = vadd.f32 %v761_v27, %v760_v25  ;;  %v488_v32 = vpop.f32.mrb[21].mxu0  ;;  %v497_v34 = vadd.f32 %v1087_v29, %v1383_v38 }
 0x10b   :  { %v489_v35 = vadd.f32 %v1383_v38, %v488_v32  ;;  %v1088_v36 = vpop.f32.mrb[22].mxu0 }
 0x10c   :  { %v764_v40 = vadd.f32 %v763_v33, %v762_v31  ;;  %v491_v41 = vpop.f32.mrb[23].mxu0  ;;  %v500_v45 = vadd.f32 %v1088_v36, %v1383_v38  ;;  %v685_v52 = vmax.f32 %v497_v34, 0.0  ;;  %v1475_v5 = vpop.f32.mrb[20].mxu1 }
 0x10d   :  { %v683_v44 = vmax.f32 %v489_v35, 0.0  ;;  %v492_v47 = vadd.f32 %v1383_v38, %v491_v41  ;;  %v1477_v10 = vpop.f32.mrb[21].mxu1 }
 0x10e   :  { %v766_v50 = vadd.f32 %v765_v43, %v764_v40  ;;  %v686_v57 = vmax.f32 %v500_v45, 0.0  ;;  %v771_v0 = vsel %vm727_vm2, %v685_v52, 0.0  ;;  %v1482_v16 = vpop.f32.mrb[22].mxu1 }
 0x10f   :  { %v767_v37 = vsel %vm727_vm2, %v683_v44, 0.0  ;;  %v684_v54 = vmax.f32 %v492_v47, 0.0  ;;  %v1484_v21 = vpop.f32.mrb[23].mxu1 }
 0x110   :  { %v768_v56 = vadd.f32 %v767_v37, %v766_v50  ;;  %v773_v11 = vsel %vm727_vm2, %v686_v57, 0.0 }
 0x111   :  { %v769_v58 = vsel %vm727_vm2, %v684_v54, 0.0  ;;  %v1091_v59 = vpop.f32.mrb[24].mxu0 }
 0x112   :  { %v770_v61 = vadd.f32 %v769_v58, %v768_v56  ;;  %v504_v62 = vpop.f32.mrb[25].mxu0  ;;  %v513_v1 = vadd.f32 %v1091_v59, %v1383_v38 }
 0x113   :  { %v505_v2 = vadd.f32 %v1383_v38, %v504_v62  ;;  %v1092_v3 = vpop.f32.mrb[26].mxu0 }
 0x114   :  { %v772_v7 = vadd.f32 %v771_v0, %v770_v61  ;;  %v507_v8 = vpop.f32.mrb[27].mxu0  ;;  %v516_v14 = vadd.f32 %v1092_v3, %v1383_v38  ;;  %v689_v22 = vmax.f32 %v513_v1, 0.0  ;;  %v1491_v41 = vpop.f32.mrb[24].mxu1 }
 0x115   :  { %v687_v13 = vmax.f32 %v505_v2, 0.0  ;;  %v508_v15 = vadd.f32 %v1383_v38, %v507_v8  ;;  %v1493_v45 = vpop.f32.mrb[25].mxu1 }
 0x116   :  { %v774_v18 = vadd.f32 %v773_v11, %v772_v7  ;;  %v690_v27 = vmax.f32 %v516_v14, 0.0  ;;  %v779_v34 = vsel %vm727_vm2, %v689_v22, 0.0  ;;  %v1498_v54 = vpop.f32.mrb[26].mxu1  ;;  %v553_v22 = vadd.f32 %v1383_v38, %v1396_v63 }
 0x117   :  { %v775_v24 = vsel %vm727_vm2, %v687_v13, 0.0  ;;  %v688_v25 = vmax.f32 %v508_v15, 0.0  ;;  %v1500_v57 = vpop.f32.mrb[27].mxu1  ;;  %v556_v63 = vadd.f32 %v1383_v38, %v1403_v6 }
 0x118   :  { %v776_v26 = vadd.f32 %v775_v24, %v774_v18  ;;  %v781_v47 = vsel %vm727_vm2, %v690_v27, 0.0 }
 0x119   :  { %v777_v29 = vsel %vm727_vm2, %v688_v25, 0.0  ;;  %v1095_v31 = vpop.f32.mrb[28].mxu0 }
 0x11a   :  { %v778_v32 = vadd.f32 %v777_v29, %v776_v26  ;;  %v520_v33 = vpop.f32.mrb[29].mxu0  ;;  %v529_v35 = vadd.f32 %v1095_v31, %v1383_v38 }
 0x11b   :  { %v521_v36 = vadd.f32 %v1383_v38, %v520_v33  ;;  %v1096_v40 = vpop.f32.mrb[30].mxu0  ;;  %v699_v33 = vmax.f32 %v553_v22, 0.0 }
 0x11c   :  { %v780_v43 = vadd.f32 %v779_v34, %v778_v32  ;;  %v523_v44 = vpop.f32.mrb[31].mxu0  ;;  %v532_v52 = vadd.f32 %v1096_v40, %v1383_v38  ;;  %v693_v58 = vmax.f32 %v529_v35, 0.0 }
 0x11d   :  { %v691_v50 = vmax.f32 %v521_v36, 0.0  ;;  %v524_v37 = vadd.f32 %v1383_v38, %v523_v44  ;;  %v561_v44 = vadd.f32 %v1394_v60, %v1383_v38  ;;  %v572_v60 = vadd.f32 %v1383_v38, %v1419_v30 }
 0x11e   :  { %v782_v56 = vadd.f32 %v781_v47, %v780_v43  ;;  %v694_v0 = vmax.f32 %v532_v52, 0.0  ;;  %v787_v8 = vsel %vm727_vm2, %v693_v58, 0.0  ;;  %v569_v58 = vadd.f32 %v1383_v38, %v1412_v23 }
 0x11f   :  { %v783_v59 = vsel %vm727_vm2, %v691_v50, 0.0  ;;  %v692_v61 = vmax.f32 %v524_v37, 0.0  ;;  %v564_v50 = vadd.f32 %v1401_v4, %v1383_v38  ;;  %v804_v37 = vsel %vm727_vm2, %v699_v33, 0.0 }
 0x120   :  { %v784_v62 = vadd.f32 %v783_v59, %v782_v56  ;;  %v789_v24 = vsel %vm727_vm2, %v694_v0, 0.0  ;;  %v700_v56 = vmax.f32 %v556_v63, 0.0  ;;  %v701_v6 = vmax.f32 %v561_v44, 0.0 }
 0x121   :  { %v785_v1 = vsel %vm727_vm2, %v692_v61, 0.0  ;;  %v1099_v2 = vpop.f32.mrb[32].mxu0 }
 0x122   :  { %v786_v3 = vadd.f32 %v785_v1, %v784_v62  ;;  %v536_v7 = vpop.f32.mrb[33].mxu0  ;;  %v545_v11 = vadd.f32 %v1099_v2, %v1383_v38  ;;  %v702_v62 = vmax.f32 %v564_v50, 0.0  ;;  %v806_v0 = vsel %vm727_vm2, %v700_v56, 0.0 }
 0x123   :  { %v537_v13 = vadd.f32 %v1383_v38, %v536_v7  ;;  %v1100_v14 = vpop.f32.mrb[34].mxu0  ;;  %v703_v1 = vmax.f32 %v569_v58, 0.0  ;;  %v808_v4 = vsel %vm727_vm2, %v701_v6, 0.0  ;;  %v609_v50 = vadd.f32 %v1443_v9, %v1383_v38 }
 0x124   :  { %v788_v15 = vadd.f32 %v787_v8, %v786_v3  ;;  %v539_v18 = vpop.f32.mrb[35].mxu0  ;;  %v548_v26 = vadd.f32 %v1100_v14, %v1383_v38  ;;  %v697_v31 = vmax.f32 %v545_v11, 0.0  ;;  %v577_v3 = vadd.f32 %v1410_v20, %v1383_v38 }
 0x125   :  { %v695_v25 = vmax.f32 %v537_v13, 0.0  ;;  %v540_v27 = vadd.f32 %v1383_v38, %v539_v18  ;;  %v810_v7 = vsel %vm727_vm2, %v702_v62, 0.0  ;;  %v812_v23 = vsel %vm727_vm2, %v703_v1, 0.0 }
 0x126   :  { %v1512_v29 = vadd.f32 %v789_v24, %v788_v15  ;;  %v698_v35 = vmax.f32 %v548_v26, 0.0  ;;  %v800_v43 = vsel %vm727_vm2, %v697_v31, 0.0  ;;  %v580_v11 = vadd.f32 %v1417_v28, %v1383_v38 }
 0x127   :  { %v696_v32 = vmax.f32 %v540_v27, 0.0  ;;  %v797_v34 = vsel %vm727_vm2, %v695_v25, 0.0  ;;  %v704_v13 = vmax.f32 %v572_v60, 0.0  ;;  %v585_v14 = vadd.f32 %v1383_v38, %v1429_v49 }
 0x128   :  { %v802_v52 = vsel %vm727_vm2, %v698_v35, 0.0  ;;  %v705_v30 = vmax.f32 %v577_v3, 0.0  ;;  %v706_v22 = vmax.f32 %v580_v11, 0.0  ;;  %v588_v20 = vadd.f32 %v1383_v38, %v1436_v55 }
 0x129   :  { %v798_v36 = vsel %vm727_vm2, %v696_v32, 0.0  ;;  %v814_v24 = vsel %vm727_vm2, %v704_v13, 0.0  ;;  %v707_v25 = vmax.f32 %v585_v14, 0.0  ;;  %v593_v28 = vadd.f32 %v1427_v46, %v1383_v38 }
 0x12a   :  { %v799_v40 = vadd.f32 %v798_v36, %v797_v34  ;;  %v816_v27 = vsel %vm727_vm2, %v705_v30, 0.0  ;;  %v596_v49 = vadd.f32 %v1434_v53, %v1383_v38  ;;  %v818_v32 = vsel %vm727_vm2, %v706_v22, 0.0 }
 0x12b   :  { %v820_v33 = vsel %vm727_vm2, %v707_v25, 0.0  ;;  %v708_v34 = vmax.f32 %v588_v20, 0.0  ;;  %v601_v35 = vadd.f32 %v1383_v38, %v1445_v12  ;;  %v709_v55 = vmax.f32 %v593_v28, 0.0 }
 0x12c   :  { %v801_v47 = vadd.f32 %v800_v43, %v799_v40  ;;  %v710_v40 = vmax.f32 %v596_v49, 0.0  ;;  %v604_v46 = vadd.f32 %v1383_v38, %v1452_v19  ;;  %v612_v56 = vadd.f32 %v1450_v17, %v1383_v38 }
 0x12d   :  { %v822_v43 = vsel %vm727_vm2, %v708_v34, 0.0  ;;  %v711_v44 = vmax.f32 %v601_v35, 0.0  ;;  %v824_v53 = vsel %vm727_vm2, %v709_v55, 0.0  ;;  %v713_v19 = vmax.f32 %v609_v50, 0.0 }
 0x12e   :  { %v803_v59 = vadd.f32 %v802_v52, %v801_v47  ;;  %v826_v52 = vsel %vm727_vm2, %v710_v40, 0.0  ;;  %v712_v58 = vmax.f32 %v604_v46, 0.0  ;;  %v714_v62 = vmax.f32 %v612_v56, 0.0 }
 0x12f   :  { %v828_v12 = vsel %vm727_vm2, %v711_v44, 0.0  ;;  %v620_v9 = vadd.f32 %v1383_v38, %v1468_v51  ;;  %v625_v17 = vadd.f32 %v1459_v39, %v1383_v38  ;;  %v636_v39 = vadd.f32 %v1383_v38, %v1484_v21 }
 0x130   :  { %v805_v61 = vadd.f32 %v804_v37, %v803_v59  ;;  %v617_v59 = vadd.f32 %v1383_v38, %v1461_v42  ;;  %v628_v42 = vadd.f32 %v1466_v48, %v1383_v38  ;;  %v834_v3 = vsel %vm727_vm2, %v714_v62, 0.0 }
 0x131   :  { %v717_v51 = vmax.f32 %v625_v17, 0.0  ;;  %v641_v22 = vadd.f32 %v1475_v5, %v1383_v38  ;;  %v644_v20 = vadd.f32 %v1482_v16, %v1383_v38  ;;  %v652_v34 = vadd.f32 %v1383_v38, %v1500_v57 }
 0x132   :  { %v807_v2 = vadd.f32 %v806_v0, %v805_v61  ;;  %v830_v0 = vsel %vm727_vm2, %v712_v58, 0.0  ;;  %v715_v1 = vmax.f32 %v617_v59, 0.0  ;;  %v718_v14 = vmax.f32 %v628_v42, 0.0 }
 0x133   :  { %v840_v48 = vsel %vm727_vm2, %v717_v51, 0.0  ;;  %v721_v21 = vmax.f32 %v641_v22, 0.0  ;;  %v657_v16 = vadd.f32 %v1491_v41, %v1383_v38  ;;  %v724_v44 = vmax.f32 %v652_v34, 0.0 }
 0x134   :  { %v809_v8 = vadd.f32 %v808_v4, %v807_v2  ;;  %v832_v2 = vsel %vm727_vm2, %v713_v19, 0.0 }
 0x136   :  { %v811_v15 = vadd.f32 %v810_v7, %v809_v8  ;;  %v836_v7 = vsel %vm727_vm2, %v715_v1, 0.0  ;;  %v716_v8 = vmax.f32 %v620_v9, 0.0 }
 0x138   :  { %v813_v18 = vadd.f32 %v812_v23, %v811_v15  ;;  %v633_v23 = vadd.f32 %v1383_v38, %v1477_v10  ;;  %v838_v15 = vsel %vm727_vm2, %v716_v8, 0.0 }
 0x13a   :  { %v815_v26 = vadd.f32 %v814_v24, %v813_v18  ;;  %v719_v30 = vmax.f32 %v633_v23, 0.0  ;;  %v842_v24 = vsel %vm727_vm2, %v718_v14, 0.0 }
 0x13c   :  { %v817_v31 = vadd.f32 %v816_v27, %v815_v26  ;;  %v844_v10 = vsel %vm727_vm2, %v719_v30, 0.0  ;;  %v720_v26 = vmax.f32 %v636_v39, 0.0  ;;  %v649_v27 = vadd.f32 %v1383_v38, %v1493_v45 }
 0x13e   :  { %v819_v36 = vadd.f32 %v818_v32, %v817_v31  ;;  %v791_v31 = vrot.slane %v1512_v29, 4  ;;  %v722_v32 = vmax.f32 %v644_v20, 0.0  ;;  %v846_v5 = vsel %vm727_vm2, %v720_v26, 0.0 }
 0x140   :  { %v821_v63 = vadd.f32 %v820_v33, %v819_v36  ;;  %v723_v33 = vmax.f32 %v649_v27, 0.0  ;;  %v848_v36 = vsel %vm727_vm2, %v721_v21, 0.0  ;;  %v792_v45 = vadd.f32 %v791_v31, %v1512_v29 }
 0x142   :  { %v823_v47 = vadd.f32 %v822_v43, %v821_v63  ;;  %v850_v63 = vsel %vm727_vm2, %v722_v32, 0.0  ;;  %v852_v40 = vsel %vm727_vm2, %v723_v33, 0.0  ;;  %v660_v43 = vadd.f32 %v1498_v54, %v1383_v38 }
 0x143   :  { %v793_v57 = vrot.slane %v792_v45, 2 }
 0x144   :  { %v825_v37 = vadd.f32 %v824_v53, %v823_v47  ;;  %v725_v47 = vmax.f32 %v657_v16, 0.0  ;;  %v726_v50 = vmax.f32 %v660_v43, 0.0 }
 0x145   :  { %v794_v29 = vadd.f32 %v793_v57, %v792_v45 }
 0x146   :  { %v827_v6 = vadd.f32 %v826_v52, %v825_v37  ;;  %v854_v52 = vsel %vm727_vm2, %v724_v44, 0.0  ;;  %v856_v41 = vsel %vm727_vm2, %v725_v47, 0.0  ;;  %v858_v56 = vsel %vm727_vm2, %v726_v50, 0.0 }
 0x147   :  { %v795_v59 = vrot.slane %v794_v29, 1 }
 0x148   :  { %v829_v61 = vadd.f32 %v828_v12, %v827_v6 }
 0x149   :  { %v796_v38 = vadd.f32 %v795_v59, %v794_v29 }
 0x14a   :  { %v831_v60 = vadd.f32 %v830_v0, %v829_v61 }
 0x14b   :  { %v867_v62 = vmul.f32 0.00390625, %v796_v38 }
 0x14c   :  { %v833_v4 = vadd.f32 %v832_v2, %v831_v60 }
 0x14d   :  { %v869_v9 = vpack.c.bf16 %v867_v62, %v867_v62 }
 0x14e   :  { %v835_v11 = vadd.f32 %v834_v3, %v833_v4 }
 0x14f   :  { %v882_v17 = vunpack.c.l.b16 %v869_v9 }
 0x150   :  { %v837_v13 = vadd.f32 %v836_v7, %v835_v11  ;;  %v1019_v7 = vld [vmem:[%s1622_s4] ss:$0 sm:$0xff] }
 0x152   :  { %v839_v18 = vadd.f32 %v838_v15, %v837_v13 }
 0x154   :  { %v841_v25 = vadd.f32 %v840_v48, %v839_v18 }
 0x156   :  { %v843_v28 = vadd.f32 %v842_v24, %v841_v25 }
 0x158   :  { %v845_v49 = vadd.f32 %v844_v10, %v843_v28 }
 0x15a   :  { %v847_v35 = vadd.f32 %v846_v5, %v845_v49 }
 0x15c   :  { %v849_v55 = vadd.f32 %v848_v36, %v847_v35 }
 0x15e   :  { %v851_v46 = vadd.f32 %v850_v63, %v849_v55 }
 0x160   :  { %v853_v53 = vadd.f32 %v852_v40, %v851_v46 }
 0x162   :  { %v855_v37 = vadd.f32 %v854_v52, %v853_v53 }
 0x164   :  { %v857_v12 = vadd.f32 %v856_v41, %v855_v37 }
 0x166   :  { %v859_v58 = vadd.f32 %v858_v56, %v857_v12 }
 0x168   :  { %v860_v6 = vrot.slane %v859_v58, 4 }
 0x16a   :  { %v861_v19 = vadd.f32 %v860_v6, %v859_v58 }
 0x16c   :  { %v862_v54 = vrot.slane %v861_v19, 2 }
 0x16e   :  { %v863_v61 = vadd.f32 %v862_v54, %v861_v19 }
 0x170   :  { %v864_v0 = vrot.slane %v863_v61, 1 }
 0x172   :  { %v865_v1 = vadd.f32 %v864_v0, %v863_v61 }
 0x174   :  { %v868_v60 = vmul.f32 0.00390625, %v865_v1 }
 0x176   :  { %v870_v2 = vpack.c.bf16 %v868_v60, %v868_v60 }
 0x178   :  { %v883_v4 = vunpack.c.l.b16 %v870_v2 }
 0x17a   :  { %v885_v42 = vsel %vm884_vm4, %v883_v4, %v882_v17 }
 0x17b   :  { %v886_v3 = vpack.c.b16 %v885_v42, %v885_v42 }
 0x17d   :  { %1132 = vmatmul.mubr.msk.bf16.vlgmr.msra.gmra.mrb[28].mxu1 %vm727_vm2, %v886_v3 }
 0x250   :  { %v930_v8 = vpop.f32.mrb[28].mxu1 }
 0x251   :  { %v931_v23 = vadd.f32 %v1019_v7, %v930_v8  ;;  %v1133_v11 = vpop.f32.mrb[29].mxu1 }
 0x252   :  { %v933_v51 = vpop.f32.mrb[30].mxu1 }
 0x253   :  { %936 = vst [vmem:[#allocation2] sm:$0x3] %v931_v23  ;;  %v1134_v13 = vpop.f32.mrb[31].mxu1 }
 0x254   :  { %1193 = shalt.err (!%p1190_p4)
}
 0x255   :  { %s1194_s4 = scalar_lea.hbm %s1623_s5, 32 }
 0x256   :  { %p1195_p5 = scmp.ne.s32.totalorder %s1623_s5, %s1194_s4  ;;  %p1198_p6 = scmp.lt.u32.totalorder %s1194_s4, %s1623_s5 }
 0x258   :  { %p1200_p7 = pnand %p1198_p6, %p1195_p5 }
 0x25a   :  { %1203 = shalt.err (!%p1200_p7)
}
 0x25b   :  { %946 = dma.vmem_to_hbm [thread:$0]  %s944_s14, 32, %s1623_s5, [#allocation3]  }
 0x25c   :  { %1204 = dma.done.wait [#allocation3], 32  }
 0x25d   :  { %1205 = vsyncadd [#allocation3], 4294967264 }
 0x25e   :  { %950 = vsyncpa [#allocation3], 1 }

</bundles_post_ra>
